<compile_context>
chip_gen: v5e
topology: v5e:2x2
jax: 0.10.0
libtpu: 0.0.40
codegen_flags: <defaults>
</compile_context>

<pallas_src>
import functools

import jax
import jax.numpy as jnp
from jax.experimental import pallas as pl
from jax.experimental.pallas import tpu as pltpu


# ---------------------------------------------------------------------------
# in-kernel helpers (class axis passed explicitly: 0 for (C,B), -1 for (B,C))
# ---------------------------------------------------------------------------
def _softmax(y, axis, out_dtype):
    """Numerically-stable softmax along `axis` (exact division)."""
    m = jnp.max(y, axis=axis, keepdims=True)
    e = jnp.exp(y - m)
    s = jnp.sum(e, axis=axis, keepdims=True)
    return (e / s).astype(out_dtype)


def _onehot_argmax(y, axis, out_dtype):
    """One-hot of the first argmax along `axis` (torch.max tie-break)."""
    n_cls = y.shape[axis]
    pos_axis = axis % y.ndim
    maxv = jnp.max(y, axis=axis, keepdims=True)
    idx = jax.lax.broadcasted_iota(jnp.int32, y.shape, dimension=pos_axis)
    first = jnp.min(jnp.where(y == maxv, idx, n_cls), axis=axis, keepdims=True)
    return (idx == first).astype(out_dtype)


# ---------------------------------------------------------------------------
# kernels
# ---------------------------------------------------------------------------
def _softmax_kernel(x_ref, o_ref, *, class_axis):
    x = x_ref[...].astype(jnp.float32)
    o_ref[...] = _softmax(x, class_axis, o_ref.dtype)


def _gumbel_kernel(x_ref, g_ref, o_ref, *, tau, hard, class_axis):
    x = x_ref[...].astype(jnp.float32)
    g = g_ref[...].astype(jnp.float32)
    if hard:
        # argmax is invariant to the positive 1/tau scale -> skip it.
        o_ref[...] = _onehot_argmax(x + g, class_axis, o_ref.dtype)
    else:
        y = (x + g) * (1.0 / tau)
        o_ref[...] = _softmax(y, class_axis, o_ref.dtype)


# ---------------------------------------------------------------------------
# wrapper
# ---------------------------------------------------------------------------
def _round_up(x, m):
    return (x + m - 1) // m * m


# Keep total double-buffered tile bytes well under v5e's 16 MiB default scoped
# VMEM (v6e/v7x default is 32 MiB, v7x physical is 64 MiB per TC).
_VMEM_BUDGET_BYTES = 12 << 20


def _pick_batch_tile(b, c, n_streams, itemsize, batch_last):
    """VMEM- and C-aware batch-tile size (multiple of the layout quantum)."""
    quantum = 128 if batch_last else 8          # lane vs. sublane granularity
    c_pad = _round_up(c, 8 if batch_last else 128)
    per_row = n_streams * 2 * c_pad * itemsize  # double-buffered streams
    max_tb = max(_VMEM_BUDGET_BYTES // per_row, quantum)
    if max_tb >= b:
        return b                                # whole batch fits in one block
    return max((max_tb // quantum) * quantum, quantum)


def categorical_activation(logits, training=True, temperature=None, key=None, seed=0):
    """Pallas implementation of CategoricalActivation.forward for (B, C) logits."""
    B, C = logits.shape
    out_dtype = logits.dtype
    itemsize = jnp.dtype(out_dtype).itemsize

    # --- layout: keep the class axis lane-dense ----------------------------
    batch_last = (C % 128 != 0)
    if batch_last:
        x = logits.T            # (C, B): batch on the 128-lane axis
        class_axis = 0
    else:
        x = logits              # (B, C): class axis already lane-dense
        class_axis = -1

    soft_only = (temperature is None) and training
    n_streams = 2 if soft_only else 3           # in(+noise) + out
    tb = _pick_batch_tile(B, C, n_streams, itemsize, batch_last)
    grid = (pl.cdiv(B, tb),)

    if batch_last:
        blk = pl.BlockSpec((C, tb), lambda i: (0, i))
    else:
        blk = pl.BlockSpec((tb, C), lambda i: (i, 0))

    compiler_params = pltpu.CompilerParams(
        # Independent batch tiles.
        # TODO(synk): on v7x, verify the batch axis actually splits across the
        # two TensorCores; if not, switch to CORE_PARALLEL / pl.core_map.
        dimension_semantics=("parallel",),
    )

    # --- training, no temperature -> plain softmax(dim=1) -------------------
    if soft_only:
        cost = pl.CostEstimate(
            flops=5 * B * C, transcendentals=B * C,
            bytes_accessed=2 * B * C * itemsize,
        )
        out = pl.pallas_call(
            functools.partial(_softmax_kernel, class_axis=class_axis),
            out_shape=jax.ShapeDtypeStruct(x.shape, out_dtype),
            grid=grid,
            in_specs=[blk],
            out_specs=blk,
            compiler_params=compiler_params,
            cost_estimate=cost,
        )(x)
        return out.T if batch_last else out

    # --- gumbel modes --------------------------------------------------------
    if temperature is not None:
        tau = float(temperature)
        hard = not training                      # gumbel_softmax(hard=not training)
    else:
        tau = 1.0
        hard = True                              # OneHotCategorical sample (Gumbel-max)

    if key is None:
        key = jax.random.PRNGKey(seed)
    # Noise in the logits dtype (kernel upcasts to f32 internally).
    gumbel = jax.random.gumbel(key, x.shape, dtype=out_dtype)

    cost = pl.CostEstimate(
        flops=6 * B * C,
        transcendentals=(0 if hard else B * C),
        bytes_accessed=3 * B * C * itemsize,
    )
    out = pl.pallas_call(
        functools.partial(_gumbel_kernel, tau=tau, hard=hard, class_axis=class_axis),
        out_shape=jax.ShapeDtypeStruct(x.shape, out_dtype),
        grid=grid,
        in_specs=[blk, blk],
        out_specs=blk,
        compiler_params=compiler_params,
        cost_estimate=cost,
    )(x, gumbel)
    return out.T if batch_last else out


# ---------------------------------------------------------------------------
# self-test
# ---------------------------------------------------------------------------
if __name__ == "__main__":
    root = jax.random.PRNGKey(0)
    k_logits, k1, k2, k3 = jax.random.split(root, 4)

    B, C = 16, 12
    logits = jax.random.normal(k_logits, (B, C), dtype=jnp.float32)

    # 1) training, no temperature -> softmax(dim=1)
    y_soft = categorical_activation(logits, training=True, temperature=None)
    # 2) training, temperature -> soft gumbel-softmax
    y_gumbel = categorical_activation(logits, training=True, temperature=0.5, key=k1)
    # 3) eval, temperature -> hard gumbel-softmax (forward value)
    y_hard = categorical_activation(logits, training=False, temperature=0.5, key=k2)
    # 4) eval, no temperature -> OneHotCategorical sample (Gumbel-max)
    y_sample = categorical_activation(logits, training=False, temperature=None, key=k3)

    # 5) lane-dense-C layout path (C multiple of 128)
    logits_wide = jax.random.normal(k_logits, (8, 128), dtype=jnp.float32)
    y_wide = categorical_activation(logits_wide, training=True, temperature=None)

    jax.block_until_ready((y_soft, y_gumbel, y_hard, y_sample, y_wide))

    # sanity checks
    ref = jax.nn.softmax(logits, axis=1)
    assert y_soft.shape == (B, C), "softmax output shape mismatch"
    assert jnp.allclose(y_soft, ref, atol=1e-5), "softmax mismatch"
    assert jnp.allclose(jnp.sum(y_gumbel, axis=1), 1.0, atol=1e-4), "gumbel soft not normalized"
    assert bool(jnp.all(jnp.sum(y_hard == 1.0, axis=1) == 1)), "hard gumbel not one-hot"
    assert bool(jnp.all((y_hard == 0.0) | (y_hard == 1.0))), "hard gumbel has non-binary values"
    assert bool(jnp.all(jnp.sum(y_sample == 1.0, axis=1) == 1)), "categorical sample not one-hot"
    assert bool(jnp.all((y_sample == 0.0) | (y_sample == 1.0))), "sample has non-binary values"
    assert jnp.allclose(y_wide, jax.nn.softmax(logits_wide, axis=1), atol=1e-5), "wide softmax mismatch"

    print("KERNEL_OK")
</pallas_src>

<mosaic_0001>
module attributes {stable_mosaic.version = 11 : i64} {
  func.func @_softmax_kernel(%arg0: i32, %arg1: memref<12x16xf32, #tpu.memory_space<vmem>>, %arg2: memref<12x16xf32, #tpu.memory_space<vmem>>) attributes {dimension_semantics = [#tpu.dimension_semantics<parallel>], iteration_bounds = array<i64: 1>, scalar_prefetch = 0 : i64, scratch_operands = 0 : i64, tpu.core_type = #tpu.core_type<tc>, window_params = [{transform_indices = @transform_0, window_bounds = array<i64: 12, 16>}, {transform_indices = @transform_1, window_bounds = array<i64: 12, 16>}]} {
    %c0 = arith.constant 0 : index
    %c0_0 = arith.constant 0 : index
    %0 = vector.load %arg1[%c0, %c0_0] : memref<12x16xf32, #tpu.memory_space<vmem>>, vector<12x16xf32>
    %cst = arith.constant dense<0xFF800000> : vector<16xf32>
    %1 = vector.multi_reduction <maximumf>, %0, %cst [0] : vector<12x16xf32> to vector<16xf32>
    %2 = vector.shape_cast %1 : vector<16xf32> to vector<1x16xf32>
    %3 = vector.broadcast %2 : vector<1x16xf32> to vector<12x16xf32>
    %4 = arith.subf %0, %3 : vector<12x16xf32>
    %5 = math.exp %4 : vector<12x16xf32>
    %cst_1 = arith.constant dense<0.000000e+00> : vector<16xf32>
    %6 = vector.multi_reduction <add>, %5, %cst_1 [0] : vector<12x16xf32> to vector<16xf32>
    %7 = vector.shape_cast %6 : vector<16xf32> to vector<1x16xf32>
    %8 = vector.broadcast %7 : vector<1x16xf32> to vector<12x16xf32>
    %9 = arith.divf %5, %8 : vector<12x16xf32>
    %c0_2 = arith.constant 0 : index
    %c0_3 = arith.constant 0 : index
    %10 = vector.load %arg2[%c0_2, %c0_3] : memref<12x16xf32, #tpu.memory_space<vmem>>, vector<12x16xf32>
    tpu.vector_store %arg2[%c0_2, %c0_3], %9 {strides = array<i32>} : memref<12x16xf32, #tpu.memory_space<vmem>>, vector<12x16xf32>,
    return
  }
  func.func @transform_0(%arg0: i32) -> (i32, i32) {
    %c0_i32 = arith.constant 0 : i32
    %c0_i32_0 = arith.constant 0 : i32
    return %c0_i32, %arg0 : i32, i32
  }
  func.func @transform_1(%arg0: i32) -> (i32, i32) {
    %c0_i32 = arith.constant 0 : i32
    %c0_i32_0 = arith.constant 0 : i32
    return %c0_i32, %arg0 : i32, i32
  }
}

</mosaic_0001>

<bundles_post_ra>
// kernel: tpu_custom_call.1
= control target key start
LH: loop header
LB: loop body
LE: loop exit
PB: predicated region body
PF: predicated region fallthrough
CT: control target
= control target key end

     0   :  { %6 = vsyncpa [#allocation3], 0  ;;  %s184_s0 = inlined_call_operand.hbm [shape: f32[12,16], index: 0, kind: input, shape index: {}]   ;;  %s185_s1 = inlined_call_operand.hbm [shape: f32[12,16], index: 1, kind: output, shape index: {}]  }
   0x1   :  { %7 = vsyncpa [#allocation4], 0  ;;  %s12_s8 = sshll.u32 %s184_s0, 4  ;;  %s152_s9 = smov [#allocation2]   ;;  %s13_s8 = int_to_ptr.hbm [resolvable:$true] %s12_s8 }
   0x2   :  { %s14_s10 = sshll.u32 %s152_s9, 4  ;;  %s153_s11 = smov 128   ;;  %s15_s10 = int_to_ptr.vmem [resolvable:$true] %s14_s10 }
   0x3   :  { %s154_s12 = smov 8  }
   0x4   :  { %20 = dma.hbm_to_vmem [thread:$0]  %s13_s8, 256, %s15_s10, [#allocation3], %s153_s11, %s153_s11, %s154_s12  }
   0x5   :  { %148 = dma.done.wait [#allocation3], 256  }
   0x6   :  { %149 = vsyncadd [#allocation3], 4294967040  ;;  %vm27_vm0 = vcmask 130048   ;;  %vm29_vm1 = vcmask 125952   ;;  %v25_v0 = vld [vmem:[#allocation2] sm:$0xff]  ;;  %s155_s0 = smov [#allocation5]  }
   0x7   :  { %v26_v1 = vld [vmem:[#allocation2 + $0x8] sm:$0xf]  ;;  %v28_v2 = vsel %vm27_vm0, %v25_v0, -inf  ;;  %s75_s13 = sshll.u32 %s155_s0, 4  ;;  %s77_s16 = sshll.u32 %s185_s1, 4  ;;  %s76_s13 = int_to_ptr.vmem [resolvable:$true] %s75_s13  ;;  %s78_s16 = int_to_ptr.hbm [resolvable:$true] %s77_s16 }
   0x8   :  { %v30_v3 = vsel %vm29_vm1, %v26_v1, -inf }
   0x9   :  { %v31_v4 = vmax.f32 %v28_v2, %v30_v3 }
   0xb   :  { %v32_v5 = vrot.slane %v31_v4, 4 }
   0xd   :  { %v33_v6 = vmax.f32 %v31_v4, %v32_v5 }
   0xf   :  { %v34_v7 = vrot.slane %v33_v6, 2 }
  0x11   :  { %v35_v8 = vmax.f32 %v33_v6, %v34_v7 }
  0x13   :  { %v36_v9 = vrot.slane %v35_v8, 1 }
  0x15   :  { %v37_v10 = vmax.f32 %v35_v8, %v36_v9 }
  0x17   :  { %v38_v11 = vsub.f32 %v25_v0, %v37_v10  ;;  %v39_v12 = vsub.f32 %v26_v1, %v37_v10 }
  0x19   :  { %v40_v13 = vmul.f32 1.442695, %v38_v11  ;;  %v42_v14 = vmul.f32 1.442695, %v39_v12 }
  0x1b   :  { %94 = vpow2.f32 %v40_v13 }
  0x1c   :  { %96 = vpow2.f32 %v42_v14 }
  0x21   :  { %v95_v15 = vpop.eup %94 }
  0x22   :  { %v97_v16 = vpop.eup %96  ;;  %v44_v17 = vsel %vm27_vm0, %v95_v15, 0.0 }
  0x23   :  { %v45_v18 = vsel %vm29_vm1, %v97_v16, 0.0 }
  0x24   :  { %v46_v19 = vadd.f32 %v45_v18, %v44_v17 }
  0x26   :  { %v47_v20 = vrot.slane %v46_v19, 4 }
  0x28   :  { %v48_v21 = vadd.f32 %v47_v20, %v46_v19 }
  0x2a   :  { %v49_v22 = vrot.slane %v48_v21, 2 }
  0x2c   :  { %v50_v23 = vadd.f32 %v49_v22, %v48_v21 }
  0x2e   :  { %v51_v24 = vrot.slane %v50_v23, 1 }
  0x30   :  { %v52_v25 = vadd.f32 %v51_v24, %v50_v23 }
  0x32   :  { %98 = vrcp.f32 %v52_v25  ;;  %v64_v28 = vand.u32 2147483648, %v52_v25  ;;  %vm58_vm2 = vweird.f32 %v52_v25  ;;  %v62_v30 = vand.u32 2147483647, %v52_v25 }
  0x34   :  { %v65_v32 = vor.u32 1.1754944e-38, %v64_v28  ;;  %vm63_vm5 = vcmp.eq.f32.partialorder %v62_v30, 8.507059e+37 }
  0x38   :  { %v99_v26 = vpop.eup %98 }
  0x39   :  { %v54_v27 = vmul.f32 %v99_v26, %v52_v25  ;;  %vm59_vm3 = vweird.f32 %v99_v26 }
  0x3a   :  { %vm60_vm4 = vmor %vm58_vm2, %vm59_vm3 }
  0x3b   :  { %v55_v29 = vsub.f32 1.0, %v54_v27 }
  0x3d   :  { %v56_v31 = vmul.f32 %v99_v26, %v55_v29 }
  0x3f   :  { %v57_v33 = vadd.f32 %v99_v26, %v56_v31 }
  0x41   :  { %v61_v34 = vsel %vm60_vm4, %v99_v26, %v57_v33 }
  0x42   :  { %v66_v35 = vsel %vm63_vm5, %v65_v32, %v61_v34 }
  0x43   :  { %v67_v36 = vmul.f32 %v95_v15, %v66_v35  ;;  %v68_v37 = vmul.f32 %v97_v16, %v66_v35 }
  0x45   :  { %69 = vst.msk [vmem:[#allocation5] sm:$0xff] %vm27_vm0, %v67_v36 }
  0x46   :  { %70 = vst.msk [vmem:[#allocation5 + $0x8] sm:$0xf] %vm29_vm1, %v68_v37 }
  0x47   :  { %83 = dma.vmem_to_hbm [thread:$0]  %s76_s13, 256, %s78_s16, [#allocation4], %s153_s11, %s153_s11, %s154_s12  }
  0x48   :  { %150 = dma.done.wait [#allocation4], 256  }
  0x49   :  { %151 = vsyncadd [#allocation4], 4294967040 }
  0x4a   :  { %88 = vsyncpa [#allocation3], 1 }
  0x4b   :  { %89 = vsyncpa [#allocation4], 1 }

</bundles_post_ra>
